<compile_context>
chip_gen: v7x
topology: tpu7x:2x2x1
jax: 0.10.0
libtpu: 0.0.40
codegen_flags: <defaults>
</compile_context>

<pallas_src>
import jax
import jax.numpy as jnp
from jax.experimental import pallas as pl
from jax.experimental.pallas import tpu as pltpu


def _round_up(n, m):
    return ((n + m - 1) // m) * m


def subnet_kernel(x_ref, w1_ref, b1_ref, w2_ref, b2_ref, w3_ref, b3_ref, o_ref):
    """One batch tile: y = relu(relu(relu(x@W1'+b1')@W2+b2)@W3+b3).

    x_ref:   (bm, in_pad)    bf16   (BatchNorm already folded into W1'/b1')
    w*_ref:  bf16 weights, padded to lane-dense shapes
    b*_ref:  (1, h_pad)      f32
    o_ref:   (bm, h_pad)     f32    (lane-dense: h_pad multiple of 128)
    """
    x = x_ref[...]
    y1 = jnp.dot(x, w1_ref[...], preferred_element_type=jnp.float32) + b1_ref[...]
    y1 = jnp.maximum(y1, 0.0).astype(x.dtype)            # bf16 for next MXU pass
    y2 = jnp.dot(y1, w2_ref[...], preferred_element_type=jnp.float32) + b2_ref[...]
    y2 = jnp.maximum(y2, 0.0).astype(x.dtype)
    y3 = jnp.dot(y2, w3_ref[...], preferred_element_type=jnp.float32) + b3_ref[...]
    o_ref[...] = jnp.maximum(y3, 0.0).astype(o_ref.dtype)


def subnet_forward(x, params, *, block_m=512, eps=1e-5,
                   compute_dtype=jnp.bfloat16, lane_mult=128):
    """x: (batch, in_size) f32. params: gamma/beta/w1..b3. Returns (batch, hidden) f32."""
    batch, in_size = x.shape
    hidden = params["w1"].shape[1]
    x32 = x.astype(jnp.float32)

    # --- BatchNorm1d (training-mode forward) folded into layer 1 -----------
    # normed = (x - mean) * rsqrt(var + eps) * gamma + beta
    #        = x * scale + shift
    # => normed @ W1 + b1 = x @ (diag(scale) @ W1) + (b1 + shift @ W1)
    mean = jnp.mean(x32, axis=0)
    var = jnp.mean((x32 - mean) ** 2, axis=0)                 # biased variance
    scale = params["gamma"] * jax.lax.rsqrt(var + eps)
    shift = params["beta"] - mean * scale
    w1_folded = params["w1"] * scale[:, None]
    b1_folded = params["b1"] + shift @ params["w1"]

    # --- Dropout: identity (eval-mode determinism) -------------------------
    # TODO(synk): training-mode dropout would use pltpu.prng_* in-kernel.

    # --- Pad to lane/sublane-friendly shapes --------------------------------
    in_pad = _round_up(in_size, lane_mult)
    h_pad = _round_up(hidden, lane_mult)
    if batch > block_m:
        bm = block_m
    else:
        bm = _round_up(max(batch, 1), 8)
    b_pad = _round_up(batch, bm)

    x_p = jnp.pad(x32, ((0, b_pad - batch), (0, in_pad - in_size))).astype(compute_dtype)
    w1_p = jnp.pad(w1_folded, ((0, in_pad - in_size), (0, h_pad - hidden))).astype(compute_dtype)
    w2_p = jnp.pad(params["w2"], ((0, h_pad - hidden), (0, h_pad - hidden))).astype(compute_dtype)
    w3_p = jnp.pad(params["w3"], ((0, h_pad - hidden), (0, h_pad - hidden))).astype(compute_dtype)
    b1_p = jnp.pad(b1_folded, (0, h_pad - hidden)).reshape(1, h_pad).astype(jnp.float32)
    b2_p = jnp.pad(params["b2"], (0, h_pad - hidden)).reshape(1, h_pad).astype(jnp.float32)
    b3_p = jnp.pad(params["b3"], (0, h_pad - hidden)).reshape(1, h_pad).astype(jnp.float32)

    grid = (b_pad // bm,)

    # Weights/biases use constant index_maps -> stay resident in VMEM across
    # batch tiles (Pallas skips re-DMA when the block index is unchanged).
    in_specs = [
        pl.BlockSpec((bm, in_pad), lambda i: (i, 0)),       # x tile
        pl.BlockSpec((in_pad, h_pad), lambda i: (0, 0)),    # W1'
        pl.BlockSpec((1, h_pad), lambda i: (0, 0)),         # b1'
        pl.BlockSpec((h_pad, h_pad), lambda i: (0, 0)),     # W2
        pl.BlockSpec((1, h_pad), lambda i: (0, 0)),         # b2
        pl.BlockSpec((h_pad, h_pad), lambda i: (0, 0)),     # W3
        pl.BlockSpec((1, h_pad), lambda i: (0, 0)),         # b3
    ]
    out_spec = pl.BlockSpec((bm, h_pad), lambda i: (i, 0))

    out_padded = pl.pallas_call(
        subnet_kernel,
        out_shape=jax.ShapeDtypeStruct((b_pad, h_pad), jnp.float32),
        grid=grid,
        in_specs=in_specs,
        out_specs=out_spec,
        compiler_params=pltpu.CompilerParams(
            dimension_semantics=("parallel",),
            vmem_limit_bytes=48 * 1024 * 1024,
        ),
    )(x_p, w1_p, b1_p, w2_p, b2_p, w3_p, b3_p)

    return out_padded[:batch, :hidden]


def init_params(key, in_size, hidden):
    """Deterministic init mirroring nn.BatchNorm1d / nn.Linear shapes."""
    ks = jax.random.split(key, 6)

    def linear_init(kw, kb, fan_in, fan_out):
        bound = 1.0 / jnp.sqrt(fan_in)
        w = jax.random.uniform(kw, (fan_in, fan_out), jnp.float32, -bound, bound)
        b = jax.random.uniform(kb, (fan_out,), jnp.float32, -bound, bound)
        return w, b

    w1, b1 = linear_init(ks[0], ks[1], in_size, hidden)
    w2, b2 = linear_init(ks[2], ks[3], hidden, hidden)
    w3, b3 = linear_init(ks[4], ks[5], hidden, hidden)
    return {
        "gamma": jnp.ones((in_size,), jnp.float32),
        "beta": jnp.zeros((in_size,), jnp.float32),
        "w1": w1, "b1": b1,
        "w2": w2, "b2": b2,
        "w3": w3, "b3": b3,
    }


if __name__ == "__main__":
    batch, in_size, hidden = 8, 16, 32
    key = jax.random.PRNGKey(0)
    k_x, k_p = jax.random.split(key)

    x = jax.random.normal(k_x, (batch, in_size), jnp.float32)
    params = init_params(k_p, in_size, hidden)

    out = jax.block_until_ready(subnet_forward(x, params))
    assert out.shape == (batch, hidden)

    # ---- Reference 1: mirror the kernel's bf16 quantization exactly -------
    mean = jnp.mean(x, axis=0)
    var = jnp.mean((x - mean) ** 2, axis=0)
    scale = params["gamma"] * jax.lax.rsqrt(var + 1e-5)
    shift = params["beta"] - mean * scale
    w1f = (params["w1"] * scale[:, None]).astype(jnp.bfloat16)
    b1f = params["b1"] + shift @ params["w1"]

    def dense_relu(a, w, b):
        return jnp.maximum(
            jnp.dot(a, w, preferred_element_type=jnp.float32) + b, 0.0)

    r1 = dense_relu(x.astype(jnp.bfloat16), w1f, b1f).astype(jnp.bfloat16)
    r2 = dense_relu(r1, params["w2"].astype(jnp.bfloat16), params["b2"]).astype(jnp.bfloat16)
    r3 = dense_relu(r2, params["w3"].astype(jnp.bfloat16), params["b3"])
    assert jnp.allclose(out, r3, atol=2e-3, rtol=2e-3), \
        float(jnp.max(jnp.abs(out - r3)))

    # ---- Reference 2: pure f32 semantics (loose, sanity only) -------------
    normed = (x - mean) / jnp.sqrt(var + 1e-5) * params["gamma"] + params["beta"]
    f1 = jnp.maximum(normed @ params["w1"] + params["b1"], 0.0)
    f2 = jnp.maximum(f1 @ params["w2"] + params["b2"], 0.0)
    f3 = jnp.maximum(f2 @ params["w3"] + params["b3"], 0.0)
    assert jnp.allclose(out, f3, atol=5e-2, rtol=5e-2), \
        float(jnp.max(jnp.abs(out - f3)))

    print("KERNEL_OK")
</pallas_src>

<mosaic_0001>
module attributes {stable_mosaic.version = 11 : i64} {
  func.func @subnet_kernel(%arg0: i32, %arg1: memref<8x128xbf16, #tpu.memory_space<vmem>>, %arg2: memref<128x128xbf16, #tpu.memory_space<vmem>>, %arg3: memref<1x128xf32, #tpu.memory_space<vmem>>, %arg4: memref<128x128xbf16, #tpu.memory_space<vmem>>, %arg5: memref<1x128xf32, #tpu.memory_space<vmem>>, %arg6: memref<128x128xbf16, #tpu.memory_space<vmem>>, %arg7: memref<1x128xf32, #tpu.memory_space<vmem>>, %arg8: memref<8x128xf32, #tpu.memory_space<vmem>>) attributes {dimension_semantics = [#tpu.dimension_semantics<parallel>], iteration_bounds = array<i64: 1>, scalar_prefetch = 0 : i64, scratch_operands = 0 : i64, tpu.core_type = #tpu.core_type<tc>, window_params = [{transform_indices = @transform_0, window_bounds = array<i64: 8, 128>}, {pipeline_mode = #tpu.pipeline_mode<synchronous>, transform_indices = @transform_1, window_bounds = array<i64: 128, 128>}, {pipeline_mode = #tpu.pipeline_mode<synchronous>, transform_indices = @transform_2, window_bounds = array<i64: 1, 128>}, {pipeline_mode = #tpu.pipeline_mode<synchronous>, transform_indices = @transform_3, window_bounds = array<i64: 128, 128>}, {pipeline_mode = #tpu.pipeline_mode<synchronous>, transform_indices = @transform_4, window_bounds = array<i64: 1, 128>}, {pipeline_mode = #tpu.pipeline_mode<synchronous>, transform_indices = @transform_5, window_bounds = array<i64: 128, 128>}, {pipeline_mode = #tpu.pipeline_mode<synchronous>, transform_indices = @transform_6, window_bounds = array<i64: 1, 128>}, {transform_indices = @transform_7, window_bounds = array<i64: 8, 128>}]} {
    %c0 = arith.constant 0 : index
    %c0_0 = arith.constant 0 : index
    %0 = vector.load %arg1[%c0, %c0_0] : memref<8x128xbf16, #tpu.memory_space<vmem>>, vector<8x128xbf16>
    %c0_1 = arith.constant 0 : index
    %c0_2 = arith.constant 0 : index
    %1 = vector.load %arg2[%c0_1, %c0_2] : memref<128x128xbf16, #tpu.memory_space<vmem>>, vector<128x128xbf16>
    %cst = arith.constant dense<0.000000e+00> : vector<8x128xf32>
    %2 = tpu.matmul %0, %1, %cst {dimension_numbers = #tpu.dot_dimension_numbers<[1], [0], [0], [1], [0, 0, 1, 1], [], []>} : vector<8x128xbf16>, vector<128x128xbf16>, vector<8x128xf32> -> vector<8x128xf32>
    %c0_3 = arith.constant 0 : index
    %c0_4 = arith.constant 0 : index
    %3 = vector.load %arg3[%c0_3, %c0_4] : memref<1x128xf32, #tpu.memory_space<vmem>>, vector<1x128xf32>
    %4 = vector.broadcast %3 : vector<1x128xf32> to vector<8x128xf32>
    %5 = arith.addf %2, %4 : vector<8x128xf32>
    %cst_5 = arith.constant 0.000000e+00 : f32
    %6 = vector.broadcast %cst_5 : f32 to vector<8x128xf32>
    %7 = arith.maximumf %5, %6 : vector<8x128xf32>
    %8 = arith.truncf %7 : vector<8x128xf32> to vector<8x128xbf16>
    %c0_6 = arith.constant 0 : index
    %c0_7 = arith.constant 0 : index
    %9 = vector.load %arg4[%c0_6, %c0_7] : memref<128x128xbf16, #tpu.memory_space<vmem>>, vector<128x128xbf16>
    %cst_8 = arith.constant dense<0.000000e+00> : vector<8x128xf32>
    %10 = tpu.matmul %8, %9, %cst_8 {dimension_numbers = #tpu.dot_dimension_numbers<[1], [0], [0], [1], [0, 0, 1, 1], [], []>} : vector<8x128xbf16>, vector<128x128xbf16>, vector<8x128xf32> -> vector<8x128xf32>
    %c0_9 = arith.constant 0 : index
    %c0_10 = arith.constant 0 : index
    %11 = vector.load %arg5[%c0_9, %c0_10] : memref<1x128xf32, #tpu.memory_space<vmem>>, vector<1x128xf32>
    %12 = vector.broadcast %11 : vector<1x128xf32> to vector<8x128xf32>
    %13 = arith.addf %10, %12 : vector<8x128xf32>
    %cst_11 = arith.constant 0.000000e+00 : f32
    %14 = vector.broadcast %cst_11 : f32 to vector<8x128xf32>
    %15 = arith.maximumf %13, %14 : vector<8x128xf32>
    %16 = arith.truncf %15 : vector<8x128xf32> to vector<8x128xbf16>
    %c0_12 = arith.constant 0 : index
    %c0_13 = arith.constant 0 : index
    %17 = vector.load %arg6[%c0_12, %c0_13] : memref<128x128xbf16, #tpu.memory_space<vmem>>, vector<128x128xbf16>
    %cst_14 = arith.constant dense<0.000000e+00> : vector<8x128xf32>
    %18 = tpu.matmul %16, %17, %cst_14 {dimension_numbers = #tpu.dot_dimension_numbers<[1], [0], [0], [1], [0, 0, 1, 1], [], []>} : vector<8x128xbf16>, vector<128x128xbf16>, vector<8x128xf32> -> vector<8x128xf32>
    %c0_15 = arith.constant 0 : index
    %c0_16 = arith.constant 0 : index
    %19 = vector.load %arg7[%c0_15, %c0_16] : memref<1x128xf32, #tpu.memory_space<vmem>>, vector<1x128xf32>
    %20 = vector.broadcast %19 : vector<1x128xf32> to vector<8x128xf32>
    %21 = arith.addf %18, %20 : vector<8x128xf32>
    %cst_17 = arith.constant 0.000000e+00 : f32
    %22 = vector.broadcast %cst_17 : f32 to vector<8x128xf32>
    %23 = arith.maximumf %21, %22 : vector<8x128xf32>
    %c0_18 = arith.constant 0 : index
    %c0_19 = arith.constant 0 : index
    %24 = vector.load %arg8[%c0_18, %c0_19] : memref<8x128xf32, #tpu.memory_space<vmem>>, vector<8x128xf32>
    tpu.vector_store %arg8[%c0_18, %c0_19], %23 {strides = array<i32>} : memref<8x128xf32, #tpu.memory_space<vmem>>, vector<8x128xf32>,
    return
  }
  func.func @transform_0(%arg0: i32) -> (i32, i32) {
    %c0_i32 = arith.constant 0 : i32
    %c0_i32_0 = arith.constant 0 : i32
    return %arg0, %c0_i32 : i32, i32
  }
  func.func @transform_1(%arg0: i32) -> (i32, i32) {
    %c0_i32 = arith.constant 0 : i32
    %c0_i32_0 = arith.constant 0 : i32
    %c0_i32_1 = arith.constant 0 : i32
    return %c0_i32, %c0_i32_0 : i32, i32
  }
  func.func @transform_2(%arg0: i32) -> (i32, i32) {
    %c0_i32 = arith.constant 0 : i32
    %c0_i32_0 = arith.constant 0 : i32
    %c0_i32_1 = arith.constant 0 : i32
    return %c0_i32, %c0_i32_0 : i32, i32
  }
  func.func @transform_3(%arg0: i32) -> (i32, i32) {
    %c0_i32 = arith.constant 0 : i32
    %c0_i32_0 = arith.constant 0 : i32
    %c0_i32_1 = arith.constant 0 : i32
    return %c0_i32, %c0_i32_0 : i32, i32
  }
  func.func @transform_4(%arg0: i32) -> (i32, i32) {
    %c0_i32 = arith.constant 0 : i32
    %c0_i32_0 = arith.constant 0 : i32
    %c0_i32_1 = arith.constant 0 : i32
    return %c0_i32, %c0_i32_0 : i32, i32
  }
  func.func @transform_5(%arg0: i32) -> (i32, i32) {
    %c0_i32 = arith.constant 0 : i32
    %c0_i32_0 = arith.constant 0 : i32
    %c0_i32_1 = arith.constant 0 : i32
    return %c0_i32, %c0_i32_0 : i32, i32
  }
  func.func @transform_6(%arg0: i32) -> (i32, i32) {
    %c0_i32 = arith.constant 0 : i32
    %c0_i32_0 = arith.constant 0 : i32
    %c0_i32_1 = arith.constant 0 : i32
    return %c0_i32, %c0_i32_0 : i32, i32
  }
  func.func @transform_7(%arg0: i32) -> (i32, i32) {
    %c0_i32 = arith.constant 0 : i32
    %c0_i32_0 = arith.constant 0 : i32
    return %arg0, %c0_i32 : i32, i32
  }
}

</mosaic_0001>

<bundles_post_ra>
// kernel: tpu_custom_call.1
= control target key start
LH: loop header
LB: loop body
LE: loop exit
PB: predicated region body
PF: predicated region fallthrough
CT: control target
= control target key end

     0   :  { %12 = vsyncpa [#allocation3], 0  ;;  %s860_s0 = inlined_call_operand.hbm [shape: bf16[8,128], index: 0, kind: input, shape index: {}]   ;;  %s861_s1 = inlined_call_operand.hbm [shape: bf16[128,128], index: 1, kind: input, shape index: {}]   ;;  %s862_s2 = inlined_call_operand.vmem [shape: f32[1,128], index: 2, kind: input, shape index: {}]   ;;  %s863_s3 = inlined_call_operand.hbm [shape: bf16[128,128], index: 3, kind: input, shape index: {}]   ;;  %s864_s4 = inlined_call_operand.vmem [shape: f32[1,128], index: 4, kind: input, shape index: {}]   ;;  %s865_s5 = inlined_call_operand.hbm [shape: bf16[128,128], index: 5, kind: input, shape index: {}]   ;;  %s866_s6 = inlined_call_operand.vmem [shape: f32[1,128], index: 6, kind: input, shape index: {}]   ;;  %s867_s7 = inlined_call_operand.hbm [shape: f32[8,128], index: 7, kind: output, shape index: {}]  }
   0x1   :  { %13 = vsyncpa [#allocation6], 0 }
   0x2   :  { %14 = vsyncpa [#allocation9], 0 }
   0x3   :  { %15 = vsyncpa [#allocation4], 0  ;;  %s703_s24 = smov [#allocation5]   ;;  %s585_s28 = scalar_lea.hbm %s861_s1, 1024 }
   0x4   :  { %s31_s25 = sshll.u32 %s703_s24, 4  ;;  %p586_p0 = scmp.ne.s32.totalorder %s861_s1, %s585_s28  ;;  %s32_s25 = int_to_ptr.vmem [resolvable:$true] %s31_s25 }
   0x5   :  { %p589_p1 = scmp.lt.u32.totalorder %s585_s28, %s861_s1 }
   0x7   :  { %p591_p2 = pnand %p589_p1, %p586_p0 }
   0x9   :  { %594 = shalt.err (!%p591_p2)
}
   0xa   :  { %s595_s10 = scalar_lea.vmem %s32_s25, 1024  ;;  %p600_p4 = scmp.lt.s32.totalorder %s32_s25, %s32_s25 }
   0xb   :  { %p596_p3 = scmp.ne.s32.totalorder %s32_s25, %s595_s10  ;;  %p601_p5 = scmp.lt.s32.totalorder %s595_s10, %s595_s10 }
   0xd   :  { %p602_p6 = por %p601_p5, %p600_p4 }
   0xf   :  { %p603_p7 = pnand %p602_p6, %p596_p3 }
  0x11   :  { %606 = shalt.err (!%p603_p7)
}
  0x12   :  { %s704_s11 = smov 64   ;;  %s705_s12 = smov 4  }
  0x13   :  { %37 = dma.hbm_to_vmem [thread:$0]  %s861_s1, 1024, %s32_s25, [#allocation6], %s704_s11, %s704_s11, %s705_s12  }
  0x14   :  { %s706_s15 = smov [#allocation2]   ;;  %s707_s17 = smov [#allocation7]  }
  0x15   :  { %s22_s16 = sshll.u32 %s706_s15, 4  ;;  %s45_s18 = sshll.u32 %s707_s17, 4  ;;  %s23_s16 = int_to_ptr.vmem [resolvable:$true] %s22_s16  ;;  %s46_s18 = int_to_ptr.vmem [resolvable:$true] %s45_s18 }
  0x16   :  { %s607_s21 = scalar_lea.hbm %s860_s0, 64 }
  0x17   :  { %p608_p8 = scmp.ne.s32.totalorder %s860_s0, %s607_s21  ;;  %p611_p9 = scmp.lt.u32.totalorder %s607_s21, %s860_s0 }
  0x19   :  { %p613_p10 = pnand %p611_p9, %p608_p8 }
  0x1b   :  { %616 = shalt.err (!%p613_p10)
}
  0x1c   :  { %s617_s1 = scalar_lea.vmem %s23_s16, 64  ;;  %p622_p12 = scmp.lt.s32.totalorder %s23_s16, %s23_s16 }
  0x1d   :  { %p618_p11 = scmp.ne.s32.totalorder %s23_s16, %s617_s1  ;;  %p623_p13 = scmp.lt.s32.totalorder %s617_s1, %s617_s1 }
  0x1f   :  { %p624_p0 = por %p623_p13, %p622_p12 }
  0x21   :  { %p625_p1 = pnand %p624_p0, %p618_p11 }
  0x23   :  { %628 = shalt.err (!%p625_p1)
}
  0x24   :  { %25 = dma.hbm_to_vmem [thread:$0]  %s860_s0, 64, %s23_s16, [#allocation3]  }
  0x25   :  { %s629_s30 = scalar_lea.hbm %s863_s3, 1024 }
  0x26   :  { %p630_p2 = scmp.ne.s32.totalorder %s863_s3, %s629_s30  ;;  %p633_p3 = scmp.lt.u32.totalorder %s629_s30, %s863_s3 }
  0x28   :  { %p635_p4 = pnand %p633_p3, %p630_p2 }
  0x2a   :  { %638 = shalt.err (!%p635_p4)
}
  0x2b   :  { %s639_s14 = scalar_lea.vmem %s46_s18, 1024  ;;  %p644_p6 = scmp.lt.s32.totalorder %s46_s18, %s46_s18 }
  0x2c   :  { %p640_p5 = scmp.ne.s32.totalorder %s46_s18, %s639_s14  ;;  %p645_p7 = scmp.lt.s32.totalorder %s639_s14, %s639_s14 }
  0x2e   :  { %p646_p8 = por %p645_p7, %p644_p6 }
  0x30   :  { %p647_p9 = pnand %p646_p8, %p640_p5 }
  0x32   :  { %650 = shalt.err (!%p647_p9)
}
  0x33   :  { %51 = dma.hbm_to_vmem [thread:$0]  %s863_s3, 1024, %s46_s18, [#allocation6], %s704_s11, %s704_s11, %s705_s12  }
  0x34   :  { %s708_s16 = smov [#allocation8]   ;;  %s651_s21 = scalar_lea.hbm %s865_s5, 1024 }
  0x35   :  { %s59_s17 = sshll.u32 %s708_s16, 4  ;;  %p652_p10 = scmp.ne.s32.totalorder %s865_s5, %s651_s21  ;;  %s60_s17 = int_to_ptr.vmem [resolvable:$true] %s59_s17 }
  0x36   :  { %p655_p11 = scmp.lt.u32.totalorder %s651_s21, %s865_s5 }
  0x38   :  { %p657_p12 = pnand %p655_p11, %p652_p10 }
  0x3a   :  { %660 = shalt.err (!%p657_p12)
}
  0x3b   :  { %s661_s1 = scalar_lea.vmem %s60_s17, 1024  ;;  %p666_p0 = scmp.lt.s32.totalorder %s60_s17, %s60_s17 }
  0x3c   :  { %p662_p13 = scmp.ne.s32.totalorder %s60_s17, %s661_s1  ;;  %p667_p1 = scmp.lt.s32.totalorder %s661_s1, %s661_s1 }
  0x3e   :  { %p668_p2 = por %p667_p1, %p666_p0 }
  0x40   :  { %p669_p3 = pnand %p668_p2, %p662_p13 }
  0x42   :  { %672 = shalt.err (!%p669_p3)
}
  0x43   :  { %65 = dma.hbm_to_vmem [thread:$0]  %s865_s5, 1024, %s60_s17, [#allocation9], %s704_s11, %s704_s11, %s705_s12  }
  0x44   :  { %695 = dma.done.wait [#allocation3], 64  }
  0x45   :  { %696 = vsyncadd [#allocation3], 4294967232 }
  0x46   :  { %697 = dma.done.wait [#allocation6], 2048  }
  0x47   :  { %698 = vsyncadd [#allocation6], 4294965248 }
  0x48   :  { %699 = dma.done.wait [#allocation9], 1024  }
  0x49   :  { %700 = vsyncadd [#allocation9], 4294966272  ;;  %v709_v0 = vmov 0.0   ;;  %vm710_vm0 = vmmov 0   ;;  %v561_v1 = vld [vmem:[#allocation5] sm:$0xff]   ;;  %v562_v2 = vld [vmem:[#allocation5 + $0x8] sm:$0xff]  }
  0x4a   :  { %492 = vmatprep.subr.bf16.mxu0 %v709_v0  ;;  %508 = vmatprep.mubr.msk.bf16.mxu0 %vm710_vm0, %v709_v0  ;;  %v563_v3 = vld [vmem:[#allocation5 + $0x10] sm:$0xff]   ;;  %v569_v4 = vld [vmem:[#allocation7] sm:$0xff]   ;;  %v564_v5 = vld [vmem:[#allocation5 + $0x18] sm:$0xff]   ;;  %s711_s28 = smov [#allocation10]  }
  0x4b   :  { %512 = vmatprep.subr.bf16.mxu1 %v709_v0  ;;  %528 = vmatprep.mubr.msk.bf16.mxu1 %vm710_vm0, %v709_v0  ;;  %v570_v6 = vld [vmem:[#allocation7 + $0x8] sm:$0xff]   ;;  %v565_v7 = vld [vmem:[#allocation5 + $0x20] sm:$0xff]   ;;  %v571_v8 = vld [vmem:[#allocation7 + $0x10] sm:$0xff]   ;;  %s427_s29 = sshll.u32 %s711_s28, 4  ;;  %s428_s29 = int_to_ptr.vmem [resolvable:$true] %s427_s29 }
  0x4c   :  { %493 = vmatpush3.bf16.msra.mxu0 %v561_v1  ;;  %513 = vmatpush3.bf16.msra.mxu1 %v569_v4  ;;  %v566_v9 = vld [vmem:[#allocation5 + $0x28] sm:$0xff]   ;;  %v572_v10 = vld [vmem:[#allocation7 + $0x18] sm:$0xff]   ;;  %v567_v11 = vld [vmem:[#allocation5 + $0x30] sm:$0xff]   ;;  %p678_p5 = scmp.lt.s32.totalorder %s428_s29, %s428_s29 }
  0x4d   :  { %494 = vmatprep.subr.bf16.mxu0 %v709_v0  ;;  %514 = vmatprep.subr.bf16.mxu1 %v709_v0  ;;  %v573_v12 = vld [vmem:[#allocation7 + $0x20] sm:$0xff]   ;;  %v568_v13 = vld [vmem:[#allocation5 + $0x38] sm:$0xff]   ;;  %v574_v14 = vld [vmem:[#allocation7 + $0x28] sm:$0xff]  }
  0x4e   :  { %v81_v15 = vld [vmem:[#allocation2] sm:$0xf]  ;;  %v575_v16 = vld [vmem:[#allocation7 + $0x30] sm:$0xff]   ;;  %v577_v18 = vld [vmem:[#allocation8] sm:$0xff]  }
  0x4f   :  { %v576_v17 = vld [vmem:[#allocation7 + $0x38] sm:$0xff]   ;;  %v578_v19 = vld [vmem:[#allocation8 + $0x8] sm:$0xff]   ;;  %v579_v20 = vld [vmem:[#allocation8 + $0x10] sm:$0xff]  }
  0x50   :  { %495 = vmatpush3.bf16.msra.mxu0 %v562_v2  ;;  %515 = vmatpush3.bf16.msra.mxu1 %v570_v6  ;;  %v580_v21 = vld [vmem:[#allocation8 + $0x18] sm:$0xff]   ;;  %v581_v22 = vld [vmem:[#allocation8 + $0x20] sm:$0xff]   ;;  %v582_v23 = vld [vmem:[#allocation8 + $0x28] sm:$0xff]  }
  0x51   :  { %496 = vmatprep.subr.bf16.mxu0 %v709_v0  ;;  %516 = vmatprep.subr.bf16.mxu1 %v709_v0  ;;  %v438_v24 = vld [vmem:[%s862_s2] ss:$0 sm:$0xff]  ;;  %v583_v32 = vld [vmem:[#allocation8 + $0x30] sm:$0xff]  }
  0x52   :  { %v584_v33 = vld [vmem:[#allocation8 + $0x38] sm:$0xff]  }
  0x53   :  { %v447_v34 = vld [vmem:[%s864_s4] ss:$0 sm:$0xff]  ;;  %s673_s4 = scalar_lea.vmem %s428_s29, 128 }
  0x54   :  { %497 = vmatpush3.bf16.msra.mxu0 %v563_v3  ;;  %517 = vmatpush3.bf16.msra.mxu1 %v571_v8  ;;  %v456_v42 = vld [vmem:[%s866_s6] ss:$0 sm:$0xff]  ;;  %p674_p4 = scmp.ne.s32.totalorder %s428_s29, %s673_s4  ;;  %p679_p6 = scmp.lt.s32.totalorder %s673_s4, %s673_s4 }
  0x55   :  { %498 = vmatprep.subr.bf16.mxu0 %v709_v0  ;;  %518 = vmatprep.subr.bf16.mxu1 %v709_v0 }
  0x56   :  { %p680_p7 = por %p679_p6, %p678_p5 }
  0x58   :  { %499 = vmatpush3.bf16.msra.mxu0 %v564_v5  ;;  %519 = vmatpush3.bf16.msra.mxu1 %v572_v10  ;;  %p681_p8 = pnand %p680_p7, %p674_p4 }
  0x59   :  { %500 = vmatprep.subr.bf16.mxu0 %v709_v0  ;;  %520 = vmatprep.subr.bf16.mxu1 %v709_v0 }
  0x5c   :  { %501 = vmatpush3.bf16.msra.mxu0 %v565_v7  ;;  %521 = vmatpush3.bf16.msra.mxu1 %v573_v12 }
  0x5d   :  { %502 = vmatprep.subr.bf16.mxu0 %v709_v0  ;;  %522 = vmatprep.subr.bf16.mxu1 %v709_v0 }
  0x60   :  { %503 = vmatpush3.bf16.msra.mxu0 %v566_v9  ;;  %523 = vmatpush3.bf16.msra.mxu1 %v574_v14 }
  0x61   :  { %504 = vmatprep.subr.bf16.mxu0 %v709_v0  ;;  %524 = vmatprep.subr.bf16.mxu1 %v709_v0 }
  0x64   :  { %505 = vmatpush3.bf16.msra.mxu0 %v567_v11  ;;  %525 = vmatpush3.bf16.msra.mxu1 %v575_v16 }
  0x65   :  { %506 = vmatprep.subr.bf16.mxu0 %v709_v0  ;;  %526 = vmatprep.subr.bf16.mxu1 %v709_v0 }
  0x68   :  { %507 = vmatpush3.bf16.msra.mxu0 %v568_v13  ;;  %527 = vmatpush3.bf16.msra.mxu1 %v576_v17 }
  0x69   :  { %532 = vmatprep.subr.bf16.mxu0 %v709_v0 }
  0x6b   :  { %509 = vmatmul.mubr.bf16.vlgmr.msra.gmra.mrb[0].mxu0 %v81_v15 }
  0x6c   :  { %548 = vmatprep.mubr.msk.bf16.mxu0 %vm710_vm0, %v709_v0  ;;  %533 = vmatpush3.bf16.msra.mxu0 %v577_v18 }
  0x6d   :  { %534 = vmatprep.subr.bf16.mxu0 %v709_v0 }
  0x70   :  { %535 = vmatpush3.bf16.msra.mxu0 %v578_v19 }
  0x71   :  { %536 = vmatprep.subr.bf16.mxu0 %v709_v0 }
  0x74   :  { %537 = vmatpush3.bf16.msra.mxu0 %v579_v20 }
  0x75   :  { %538 = vmatprep.subr.bf16.mxu0 %v709_v0 }
  0x78   :  { %539 = vmatpush3.bf16.msra.mxu0 %v580_v21 }
  0x79   :  { %540 = vmatprep.subr.bf16.mxu0 %v709_v0 }
  0x7c   :  { %541 = vmatpush3.bf16.msra.mxu0 %v581_v22 }
  0x7d   :  { %542 = vmatprep.subr.bf16.mxu0 %v709_v0 }
  0x80   :  { %543 = vmatpush3.bf16.msra.mxu0 %v582_v23 }
  0x81   :  { %544 = vmatprep.subr.bf16.mxu0 %v709_v0 }
  0x84   :  { %545 = vmatpush3.bf16.msra.mxu0 %v583_v32 }
  0x85   :  { %546 = vmatprep.subr.bf16.mxu0 %v709_v0 }
  0x88   :  { %547 = vmatpush3.bf16.msra.mxu0 %v584_v33 }
 0x13e   :  { %v187_v25 = vpop.f32.mrb[0].mxu0 }
 0x13f   :  { %v188_v26 = vadd.f32 %v438_v24, %v187_v25  ;;  %v510_v27 = vpop.f32.mrb[1].mxu0 }
 0x140   :  { %v190_v28 = vpop.f32.mrb[2].mxu0 }
 0x141   :  { %v193_v29 = vmax.f32 %v188_v26, 0.0  ;;  %v511_v30 = vpop.f32.mrb[3].mxu0 }
 0x143   :  { %v194_v31 = vpack.c.bf16 %v193_v29, %v193_v29 }
 0x145   :  { %529 = vmatmul.mubr.bf16.vlgmr.msra.gmra.mrb[0].mxu1 %v194_v31 }
 0x218   :  { %v300_v35 = vpop.f32.mrb[0].mxu1 }
 0x219   :  { %v301_v36 = vadd.f32 %v447_v34, %v300_v35  ;;  %v530_v37 = vpop.f32.mrb[1].mxu1 }
 0x21a   :  { %v303_v38 = vpop.f32.mrb[2].mxu1 }
 0x21b   :  { %v306_v39 = vmax.f32 %v301_v36, 0.0  ;;  %v531_v40 = vpop.f32.mrb[3].mxu1 }
 0x21d   :  { %v307_v41 = vpack.c.bf16 %v306_v39, %v306_v39 }
 0x21f   :  { %549 = vmatmul.mubr.bf16.vlgmr.msra.gmra.mrb[4].mxu0 %v307_v41 }
 0x2f2   :  { %v413_v43 = vpop.f32.mrb[4].mxu0 }
 0x2f3   :  { %v414_v44 = vadd.f32 %v456_v42, %v413_v43  ;;  %v550_v45 = vpop.f32.mrb[5].mxu0 }
 0x2f4   :  { %v416_v46 = vpop.f32.mrb[6].mxu0 }
 0x2f5   :  { %v419_v47 = vmax.f32 %v414_v44, 0.0  ;;  %v551_v48 = vpop.f32.mrb[7].mxu0 }
 0x2f7   :  { %420 = vst [vmem:[#allocation10] sm:$0xff] %v419_v47 }
 0x2f8   :  { %684 = shalt.err (!%p681_p8)
}
 0x2f9   :  { %s685_s6 = scalar_lea.hbm %s867_s7, 128 }
 0x2fa   :  { %p686_p9 = scmp.ne.s32.totalorder %s867_s7, %s685_s6  ;;  %p689_p10 = scmp.lt.u32.totalorder %s685_s6, %s867_s7 }
 0x2fc   :  { %p691_p11 = pnand %p689_p10, %p686_p9 }
 0x2fe   :  { %694 = shalt.err (!%p691_p11)
}
 0x2ff   :  { %430 = dma.vmem_to_hbm [thread:$0]  %s428_s29, 128, %s867_s7, [#allocation4]  }
 0x300   :  { %701 = dma.done.wait [#allocation4], 128  }
 0x301   :  { %702 = vsyncadd [#allocation4], 4294967168 }
 0x302   :  { %434 = vsyncpa [#allocation3], 1 }
 0x303   :  { %435 = vsyncpa [#allocation6], 1 }
 0x304   :  { %436 = vsyncpa [#allocation9], 1 }
 0x305   :  { %437 = vsyncpa [#allocation4], 1 }

</bundles_post_ra>
